<compile_context>
chip_gen: v5e
topology: v5e:2x2
jax: 0.10.0
libtpu: 0.0.40
codegen_flags: <defaults>
</compile_context>

<pallas_src>
import jax
import jax.numpy as jnp
from jax.experimental import pallas as pl
from jax.experimental.pallas import tpu as pltpu


def _round_up(x: int, m: int) -> int:
    return (x + m - 1) // m * m


def _embed_kernel(y_ref, table_ref, out_ref):
    """One-hot-matmul gather of TB table rows into a dense (TB, E_pad) tile.

    y_ref     : (TB, 1)     int32  VMEM
    table_ref : (V1, E_pad) f32    VMEM (grid-invariant / resident)
    out_ref   : (TB, E_pad) f32    VMEM
    """
    tb = out_ref.shape[0]
    v1 = table_ref.shape[0]
    idx = y_ref[...]                                          # (TB, 1)
    iota = jax.lax.broadcasted_iota(jnp.int32, (tb, v1), 1)   # (TB, V1)
    onehot = (iota == idx).astype(table_ref.dtype)            # exact 0.0 / 1.0
    # Single nonzero term per output row -> numerically exact gather.
    out_ref[...] = jnp.dot(
        onehot, table_ref[...], preferred_element_type=jnp.float32
    ).astype(out_ref.dtype)


@jax.jit
def _embedding_lookup(y, emb_table):
    """Rows of `emb_table` gathered at indices `y` via a Pallas kernel."""
    B = y.shape[0]
    V1, E = emb_table.shape
    dt_bytes = jnp.dtype(emb_table.dtype).itemsize

    # Lane-align the embedding dim (dense vst instead of masked partial stores).
    E_pad = _round_up(E, 128)
    if E_pad != E:
        emb_table = jnp.pad(emb_table, ((0, 0), (0, E_pad - E)))

    # Batch multiple rows per grid step (f32 sublane multiple of 8).
    TB = min(256, _round_up(B, 8))
    B_pad = _round_up(B, TB)

    # Clamp indices so no out-of-range gather can ever be issued.
    y = jnp.clip(y.astype(jnp.int32), 0, V1 - 1)
    if B_pad != B:
        y = jnp.pad(y, (0, B_pad - B))  # padded rows gather row 0, then dropped
    y2d = y.reshape(B_pad, 1)

    grid = (B_pad // TB,)

    # Resident table (+pipeline buffer) + double-buffered out/idx tiles + margin.
    needed = (2 * V1 * E_pad * dt_bytes
              + 2 * TB * E_pad * dt_bytes
              + 2 * TB * 4
              + (2 << 20))
    vmem_limit = int(min(max(needed, 8 << 20), 64 << 20))
    # TODO(synk): for tables that exceed the VMEM budget (~48 MiB on v7x) switch
    # to a manual multi-DMA gather from HBM (memory_space=pl.ANY) with dedup.

    out = pl.pallas_call(
        _embed_kernel,
        out_shape=jax.ShapeDtypeStruct((B_pad, E_pad), emb_table.dtype),
        grid_spec=pltpu.PrefetchScalarGridSpec(
            num_scalar_prefetch=0,
            grid=grid,
            in_specs=[
                # Per-step index tile.
                pl.BlockSpec((TB, 1), lambda i: (i, 0)),
                # Grid-invariant (resident) full table: DMA'd once, kept in VMEM.
                pl.BlockSpec((V1, E_pad), lambda i: (0, 0)),
            ],
            out_specs=pl.BlockSpec((TB, E_pad), lambda i: (i, 0)),
        ),
        compiler_params=pltpu.CompilerParams(
            dimension_semantics=("parallel",),
            vmem_limit_bytes=vmem_limit,
        ),
    )(y2d, emb_table)

    return out[:B, :E]


class ClassEmbedder:
    """JAX/Pallas port of the PyTorch ClassEmbedder."""

    def __init__(self, num_classes: int, emb_size: int,
                 drop_probability: float = 0.1, *, param_key=None):
        self.num_classes = num_classes
        self.emb_size = emb_size
        self.drop_probability = drop_probability
        if param_key is None:
            param_key = jax.random.PRNGKey(0)
        # nn.Embedding default init: N(0, 1); table has num_classes + 1 rows
        # (last row = "null"/unconditional class).
        self.embedding = jax.random.normal(
            param_key, (num_classes + 1, emb_size), dtype=jnp.float32)

    def __call__(self, y, *, training: bool = False, rng=None):
        if training:
            # Matches the PyTorch source literally:
            #   torch.where(rand(B) < drop_probability, y, num_classes)
            # (i.e. the real class is KEPT only when rand < drop_probability).
            u = jax.random.uniform(rng, (y.shape[0],))
            y = jnp.where(u < self.drop_probability, y, self.num_classes)
        return _embedding_lookup(y, self.embedding)


if __name__ == "__main__":
    key = jax.random.PRNGKey(0)
    k_param, k_idx, k_drop, k_param2, k_idx2 = jax.random.split(key, 5)

    # --- main demo: lane-aligned embedding dim, batch multiple of 8 ---
    num_classes = 10
    emb_size = 128
    batch = 8

    module = ClassEmbedder(num_classes, emb_size, drop_probability=0.1,
                           param_key=k_param)
    y = jax.random.randint(k_idx, (batch,), 0, num_classes, dtype=jnp.int32)

    out = module(y, training=False)
    out = jax.block_until_ready(out)
    ref = jnp.take(module.embedding, y, axis=0)
    assert out.shape == (batch, emb_size)
    assert jnp.allclose(out, ref), "Pallas embedding lookup mismatch"

    # Training-mode forward (random class drop) also runs through the kernel.
    out_train = module(y, training=True, rng=k_drop)
    out_train = jax.block_until_ready(out_train)
    assert out_train.shape == (batch, emb_size)

    # --- second check: non-lane-aligned E and ragged batch (exercises padding) ---
    module2 = ClassEmbedder(7, 96, drop_probability=0.1, param_key=k_param2)
    y2 = jax.random.randint(k_idx2, (5,), 0, 7, dtype=jnp.int32)
    out2 = jax.block_until_ready(module2(y2, training=False))
    ref2 = jnp.take(module2.embedding, y2, axis=0)
    assert out2.shape == (5, 96)
    assert jnp.allclose(out2, ref2), "Pallas embedding lookup mismatch (padded case)"

    print("KERNEL_OK")
</pallas_src>

<mosaic_0001>
module attributes {stable_mosaic.version = 11 : i64} {
  func.func @_embed_kernel(%arg0: i32, %arg1: memref<8x1xi32, #tpu.memory_space<vmem>>, %arg2: memref<11x128xf32, #tpu.memory_space<vmem>>, %arg3: memref<8x128xf32, #tpu.memory_space<vmem>>) attributes {dimension_semantics = [#tpu.dimension_semantics<parallel>], iteration_bounds = array<i64: 1>, scalar_prefetch = 0 : i64, scratch_operands = 0 : i64, tpu.core_type = #tpu.core_type<tc>, window_params = [{transform_indices = @transform_0, window_bounds = array<i64: 8, 1>}, {pipeline_mode = #tpu.pipeline_mode<synchronous>, transform_indices = @transform_1, window_bounds = array<i64: 11, 128>}, {transform_indices = @transform_2, window_bounds = array<i64: 8, 128>}]} {
    %c0 = arith.constant 0 : index
    %c0_0 = arith.constant 0 : index
    %0 = vector.load %arg1[%c0, %c0_0] : memref<8x1xi32, #tpu.memory_space<vmem>>, vector<8x1xi32>
    %1 = tpu.iota {dimensions = array<i32: 1>} : vector<8x11xi32>
    %2 = vector.broadcast %0 : vector<8x1xi32> to vector<8x11xi32>
    %3 = arith.cmpi eq, %1, %2 : vector<8x11xi32>
    %4 = arith.extui %3 : vector<8x11xi1> to vector<8x11xi32>
    %5 = arith.sitofp %4 : vector<8x11xi32> to vector<8x11xf32>
    %c0_1 = arith.constant 0 : index
    %c0_2 = arith.constant 0 : index
    %6 = vector.load %arg2[%c0_1, %c0_2] : memref<11x128xf32, #tpu.memory_space<vmem>>, vector<11x128xf32>
    %cst = arith.constant dense<0.000000e+00> : vector<8x128xf32>
    %7 = tpu.matmul %5, %6, %cst {dimension_numbers = #tpu.dot_dimension_numbers<[1], [0], [0], [1], [0, 0, 1, 1], [], []>} : vector<8x11xf32>, vector<11x128xf32>, vector<8x128xf32> -> vector<8x128xf32>
    %c0_3 = arith.constant 0 : index
    %c0_4 = arith.constant 0 : index
    %8 = vector.load %arg3[%c0_3, %c0_4] : memref<8x128xf32, #tpu.memory_space<vmem>>, vector<8x128xf32>
    tpu.vector_store %arg3[%c0_3, %c0_4], %7 {strides = array<i32>} : memref<8x128xf32, #tpu.memory_space<vmem>>, vector<8x128xf32>,
    return
  }
  func.func @transform_0(%arg0: i32) -> (i32, i32) {
    %c0_i32 = arith.constant 0 : i32
    %c0_i32_0 = arith.constant 0 : i32
    return %arg0, %c0_i32 : i32, i32
  }
  func.func @transform_1(%arg0: i32) -> (i32, i32) {
    %c0_i32 = arith.constant 0 : i32
    %c0_i32_0 = arith.constant 0 : i32
    %c0_i32_1 = arith.constant 0 : i32
    return %c0_i32, %c0_i32_0 : i32, i32
  }
  func.func @transform_2(%arg0: i32) -> (i32, i32) {
    %c0_i32 = arith.constant 0 : i32
    %c0_i32_0 = arith.constant 0 : i32
    return %arg0, %c0_i32 : i32, i32
  }
}

</mosaic_0001>

<bundles_post_ra>
// kernel: _embedding_lookup.1
= control target key start
LH: loop header
LB: loop body
LE: loop exit
PB: predicated region body
PF: predicated region fallthrough
CT: control target
= control target key end

     0   :  { %7 = vsyncpa [#allocation3], 0  ;;  %s177_s0 = inlined_call_operand.vmem [shape: s32[8,1], index: 0, kind: input, shape index: {}]   ;;  %s178_s1 = inlined_call_operand.hbm [shape: f32[11,128], index: 1, kind: input, shape index: {}]   ;;  %s179_s2 = inlined_call_operand.hbm [shape: f32[8,128], index: 2, kind: output, shape index: {}]  }
   0x1   :  { %8 = vsyncpa [#allocation4], 0  ;;  %s15_s11 = sshll.u32 %s178_s1, 4  ;;  %s147_s12 = smov [#allocation2]   ;;  %s16_s11 = int_to_ptr.hbm [resolvable:$true] %s15_s11 }
   0x2   :  { %s17_s13 = sshll.u32 %s147_s12, 4  ;;  %s148_s14 = smov 128   ;;  %s18_s13 = int_to_ptr.vmem [resolvable:$true] %s17_s13 }
   0x3   :  { %s149_s15 = smov 8  }
   0x4   :  { %23 = dma.hbm_to_vmem [thread:$0]  %s16_s11, 256, %s18_s13, [#allocation3], %s148_s14, %s148_s14, %s149_s15  }
   0x5   :  { %143 = dma.done.wait [#allocation3], 256  }
   0x6   :  { %144 = vsyncadd [#allocation3], 4294967040  ;;  %v150_v0 = vmov 0   ;;  %vm43_vm0 = vcmask 1042432   ;;  %v28_v1 = vld [vmem:[%s177_s0] sm:$0xff]  ;;  %v29_v4 = vlaneseq  ;;  %vm39_vm1 = vcmask 89088  }
   0x7   :  { %94 = vset.pattern.permute.xlu0 %v150_v0  ;;  %v38_v2 = vld [vmem:[#allocation2 + $0x8] sm:$0x7]  ;;  %v37_v3 = vld [vmem:[#allocation2] sm:$0xff]  ;;  %v151_v7 = vmov 0.0   ;;  %s152_s1 = smov [#allocation5]   ;;  %s75_s21 = sshll.u32 %s179_s2, 4  ;;  %s76_s21 = int_to_ptr.hbm [resolvable:$true] %s75_s21 }
   0x8   :  { %32 = vperm.xlu0 %94, %v28_v1   ;;  %86 = vmatpush.msk.msra.mxu0 %vm43_vm0, %v38_v2  ;;  %v30_v5 = vand.u32 127, %v29_v4  ;;  %s73_s18 = sshll.u32 %s152_s1, 4  ;;  %s74_s18 = int_to_ptr.vmem [resolvable:$true] %s73_s18 }
   0xa   :  { %62 = vmatpush.msra.mxu0 %v37_v3 }
  0x7a   :  { %v33_v6 = vpop.permute.xlu0 %32 }
  0x7b   :  { %vm34_vm2 = vcmp.eq.s32.totalorder %v30_v5, %v33_v6 }
  0x7c   :  { %v85_v8 = vsel %vm34_vm2, 1.0, %v151_v7 }
  0x7d   :  { %87 = vmatmul.msk.f32.vlgmr.msra.gmra.mxu0 %vm39_vm1, %v85_v8 }
  0xfa   :  { %v64_v9 = vpop.f32.mrf.mxu0 }
  0xfb   :  { %67 = vst [vmem:[#allocation5] sm:$0xff] %v64_v9 }
  0xfc   :  { %78 = dma.vmem_to_hbm [thread:$0]  %s74_s18, 128, %s76_s21, [#allocation4]  }
  0xfd   :  { %145 = dma.done.wait [#allocation4], 128  }
  0xfe   :  { %146 = vsyncadd [#allocation4], 4294967168 }
  0xff   :  { %83 = vsyncpa [#allocation3], 1 }
 0x100   :  { %84 = vsyncpa [#allocation4], 1 }

</bundles_post_ra>
